<compile_context>
chip_gen: v6e
topology: v6e:2x2x1
jax: 0.10.0
libtpu: 0.0.40
codegen_flags: <defaults>
</compile_context>

<pallas_src>
import jax
import jax.numpy as jnp
from jax.experimental import pallas as pl
from jax.experimental.pallas import tpu as pltpu


def vit_output_kernel(h_ref, w_ref, b_ref, res_ref, o_ref):
    # MXU matmul with f32 accumulation, then bias + residual add on the VPU.
    acc = jnp.dot(h_ref[...], w_ref[...], preferred_element_type=jnp.float32)
    acc = acc + b_ref[...] + res_ref[...].astype(jnp.float32)
    o_ref[...] = acc.astype(o_ref.dtype)
    # TODO(synk): training-mode dropout (pltpu.prng_seed + prng_random_bits
    # masking) not implemented; forward matches eval-mode (identity) dropout.


def _cdiv(a, b):
    return (a + b - 1) // b


def _round_up(x, m):
    return ((x + m - 1) // m) * m


def vit_output(hidden_states, input_tensor, weight, bias, *,
               tm_max=512, tn_max=512, compute_dtype=jnp.bfloat16,
               vmem_limit_bytes=None):
    """hidden_states: [B, S, K], input_tensor: [B, S, N],
    weight: [K, N], bias: [N] -> returns [B, S, N].

    compute_dtype: dtype for the MXU operands (hidden_states and weight only).
    Defaults to bf16; accumulation, bias and the residual add remain f32.
    Pass jnp.float32 (or None) for a full-precision matmul.
    """
    B, S, K = hidden_states.shape
    N = weight.shape[1]
    M = B * S
    out_dtype = input_tensor.dtype

    # Cast only the matmul operands; the residual keeps its original dtype.
    if compute_dtype is not None:
        if hidden_states.dtype != compute_dtype:
            hidden_states = hidden_states.astype(compute_dtype)
        if weight.dtype != compute_dtype:
            weight = weight.astype(compute_dtype)

    h2d = hidden_states.reshape(M, K)
    r2d = input_tensor.reshape(M, N)
    b2d = bias.astype(jnp.float32).reshape(1, N)   # hoisted upcast

    h_bytes = jnp.dtype(h2d.dtype).itemsize
    w_bytes = jnp.dtype(weight.dtype).itemsize
    r_bytes = jnp.dtype(r2d.dtype).itemsize
    o_bytes = jnp.dtype(out_dtype).itemsize

    # ---- Row (M) tiling ---------------------------------------------------
    # Guarantee >= 2 grid steps whenever there are enough rows, so the v7x
    # megacore has work for both TensorCores and the pipeline can overlap.
    if M <= tm_max:
        tm = _round_up(_cdiv(M, 2), 8) if M >= 16 else M
    else:
        tm = tm_max
    grid_m = _cdiv(M, tm)

    # ---- Column (N) tiling --------------------------------------------------
    # Only for the small-M (inference) regime: stream the weight in lane-dense
    # K x tn stripes so its DMA overlaps compute and VMEM residency drops.
    tn = N
    if grid_m < 4 and N % 128 == 0:
        for cand in (512, 384, 256, 128):
            if cand <= tn_max and cand < N and N % cand == 0:
                tn = cand
                break
    grid_n = N // tn if N % tn == 0 else _cdiv(N, tn)

    # ---- VMEM accounting ----------------------------------------------------
    headroom = 8 * 1024 * 1024           # Mosaic internal scratch, semaphores
    budget = 56 * 1024 * 1024            # safe on v7x (64 MiB physical per TC)

    def _need(tm_, tn_, gn_):
        w_bufs = 1 if gn_ == 1 else 2    # resident weight is single-buffered
        return (w_bufs * K * tn_ * w_bytes
                + w_bufs * tn_ * 4                # f32 bias
                + 2 * tm_ * K * h_bytes           # activations (double-buffered)
                + 2 * tm_ * tn_ * r_bytes         # residual
                + 2 * tm_ * tn_ * o_bytes)        # output

    while tm > 8 and _need(tm, tn, grid_n) + headroom > budget:
        tm = max(8, _round_up(tm // 2, 8))
        grid_m = _cdiv(M, tm)

    if vmem_limit_bytes is None:
        vmem_limit_bytes = max(_need(tm, tn, grid_n) + headroom,
                               32 * 1024 * 1024)

    # ---- pallas_call --------------------------------------------------------
    def _build(single_buffer_resident):
        if grid_n == 1 and single_buffer_resident:
            # Constant index_map -> block never changes; one buffer suffices.
            w_spec = pl.BlockSpec((K, tn), lambda j, i: (0, j),
                                  pipeline_mode=pl.Buffered(1))
            b_spec = pl.BlockSpec((1, tn), lambda j, i: (0, j),
                                  pipeline_mode=pl.Buffered(1))
        else:
            w_spec = pl.BlockSpec((K, tn), lambda j, i: (0, j))
            b_spec = pl.BlockSpec((1, tn), lambda j, i: (0, j))

        return pl.pallas_call(
            vit_output_kernel,
            out_shape=jax.ShapeDtypeStruct((M, N), out_dtype),
            grid_spec=pltpu.PrefetchScalarGridSpec(
                num_scalar_prefetch=0,
                grid=(grid_n, grid_m),            # M is the fast axis
                in_specs=[
                    # activations: new tile per M step
                    pl.BlockSpec((tm, K), lambda j, i: (i, 0)),
                    # weight: resident (grid_n==1) or streamed column stripes
                    w_spec,
                    # bias (f32)
                    b_spec,
                    # residual: new tile per (M, N) step, original dtype
                    pl.BlockSpec((tm, tn), lambda j, i: (i, j)),
                ],
                out_specs=pl.BlockSpec((tm, tn), lambda j, i: (i, j)),
            ),
            compiler_params=pltpu.CompilerParams(
                dimension_semantics=("parallel", "parallel"),
                vmem_limit_bytes=int(vmem_limit_bytes),
            ),
        )

    try:
        out2d = _build(True)(h2d, weight, b2d, r2d)
    except Exception:
        # Fallback if this Pallas version rejects Buffered(1) single-buffering.
        out2d = _build(False)(h2d, weight, b2d, r2d)

    return out2d.reshape(B, S, N)


if __name__ == "__main__":
    # Small config: batch=2, seq=8, intermediate_size=64, hidden_size=32
    B, S = 2, 8
    intermediate_size = 64
    hidden_size = 32

    key = jax.random.PRNGKey(0)
    k_h, k_r, k_w, k_b = jax.random.split(key, 4)

    hidden_states = jax.random.normal(k_h, (B, S, intermediate_size),
                                      dtype=jnp.float32)
    input_tensor = jax.random.normal(k_r, (B, S, hidden_size),
                                     dtype=jnp.float32)

    # Deterministic parameter init (synthetic, not a checkpoint load).
    # PyTorch nn.Linear stores weight as [hidden, intermediate]; we keep the
    # transposed [intermediate, hidden] layout so the kernel does x @ W.
    weight = (jax.random.normal(k_w, (intermediate_size, hidden_size),
                                dtype=jnp.float32)
              * (1.0 / jnp.sqrt(intermediate_size)))
    bias = jax.random.normal(k_b, (hidden_size,), dtype=jnp.float32) * 0.01

    # f32 compute path: tight check against plain-JAX reference.
    out_f32 = vit_output(hidden_states, input_tensor, weight, bias,
                         compute_dtype=jnp.float32)
    out_f32 = jax.block_until_ready(out_f32)
    ref_f32 = (jnp.einsum("bsk,kn->bsn", hidden_states, weight)
               + bias + input_tensor)
    assert out_f32.shape == (B, S, hidden_size)
    assert jnp.allclose(out_f32, ref_f32, atol=1e-4, rtol=1e-4)

    # Default bf16 compute path (production default): check against a
    # reference that uses the same bf16 operands with f32 accumulation.
    out_bf16 = vit_output(hidden_states, input_tensor, weight, bias)
    out_bf16 = jax.block_until_ready(out_bf16)
    ref_bf16 = (jnp.einsum("bsk,kn->bsn",
                           hidden_states.astype(jnp.bfloat16),
                           weight.astype(jnp.bfloat16),
                           preferred_element_type=jnp.float32)
                + bias + input_tensor)
    assert out_bf16.shape == (B, S, hidden_size)
    assert jnp.allclose(out_bf16, ref_bf16, atol=2e-2, rtol=2e-2)

    print("KERNEL_OK")
</pallas_src>

<mosaic_0001>
module attributes {stable_mosaic.version = 11 : i64} {
  func.func @vit_output_kernel(%arg0: i32, %arg1: i32, %arg2: memref<8x64xf32, #tpu.memory_space<vmem>>, %arg3: memref<64x32xf32, #tpu.memory_space<vmem>>, %arg4: memref<1x32xf32, #tpu.memory_space<vmem>>, %arg5: memref<8x32xf32, #tpu.memory_space<vmem>>, %arg6: memref<8x32xf32, #tpu.memory_space<vmem>>) attributes {dimension_semantics = [#tpu.dimension_semantics<parallel>, #tpu.dimension_semantics<parallel>], iteration_bounds = array<i64: 1, 2>, scalar_prefetch = 0 : i64, scratch_operands = 0 : i64, tpu.core_type = #tpu.core_type<tc>, window_params = [{transform_indices = @transform_0, window_bounds = array<i64: 8, 64>}, {pipeline_mode = #tpu.pipeline_mode<synchronous>, transform_indices = @transform_1, window_bounds = array<i64: 64, 32>}, {pipeline_mode = #tpu.pipeline_mode<synchronous>, transform_indices = @transform_2, window_bounds = array<i64: 1, 32>}, {transform_indices = @transform_3, window_bounds = array<i64: 8, 32>}, {transform_indices = @transform_4, window_bounds = array<i64: 8, 32>}]} {
    %c0 = arith.constant 0 : index
    %c0_0 = arith.constant 0 : index
    %0 = vector.load %arg2[%c0, %c0_0] : memref<8x64xf32, #tpu.memory_space<vmem>>, vector<8x64xf32>
    %c0_1 = arith.constant 0 : index
    %c0_2 = arith.constant 0 : index
    %1 = vector.load %arg3[%c0_1, %c0_2] : memref<64x32xf32, #tpu.memory_space<vmem>>, vector<64x32xf32>
    %cst = arith.constant dense<0.000000e+00> : vector<8x32xf32>
    %2 = tpu.matmul %0, %1, %cst {dimension_numbers = #tpu.dot_dimension_numbers<[1], [0], [0], [1], [0, 0, 1, 1], [], []>} : vector<8x64xf32>, vector<64x32xf32>, vector<8x32xf32> -> vector<8x32xf32>
    %c0_3 = arith.constant 0 : index
    %c0_4 = arith.constant 0 : index
    %3 = vector.load %arg4[%c0_3, %c0_4] : memref<1x32xf32, #tpu.memory_space<vmem>>, vector<1x32xf32>
    %4 = vector.broadcast %3 : vector<1x32xf32> to vector<8x32xf32>
    %5 = arith.addf %2, %4 : vector<8x32xf32>
    %c0_5 = arith.constant 0 : index
    %c0_6 = arith.constant 0 : index
    %6 = vector.load %arg5[%c0_5, %c0_6] : memref<8x32xf32, #tpu.memory_space<vmem>>, vector<8x32xf32>
    %7 = arith.addf %5, %6 : vector<8x32xf32>
    %c0_7 = arith.constant 0 : index
    %c0_8 = arith.constant 0 : index
    %8 = vector.load %arg6[%c0_7, %c0_8] : memref<8x32xf32, #tpu.memory_space<vmem>>, vector<8x32xf32>
    tpu.vector_store %arg6[%c0_7, %c0_8], %7 {strides = array<i32>} : memref<8x32xf32, #tpu.memory_space<vmem>>, vector<8x32xf32>,
    return
  }
  func.func @transform_0(%arg0: i32, %arg1: i32) -> (i32, i32) {
    %c0_i32 = arith.constant 0 : i32
    %c0_i32_0 = arith.constant 0 : i32
    return %arg1, %c0_i32 : i32, i32
  }
  func.func @transform_1(%arg0: i32, %arg1: i32) -> (i32, i32) {
    %c0_i32 = arith.constant 0 : i32
    %c0_i32_0 = arith.constant 0 : i32
    return %c0_i32, %arg0 : i32, i32
  }
  func.func @transform_2(%arg0: i32, %arg1: i32) -> (i32, i32) {
    %c0_i32 = arith.constant 0 : i32
    %c0_i32_0 = arith.constant 0 : i32
    return %c0_i32, %arg0 : i32, i32
  }
  func.func @transform_3(%arg0: i32, %arg1: i32) -> (i32, i32) {
    %c0_i32 = arith.constant 0 : i32
    return %arg1, %arg0 : i32, i32
  }
  func.func @transform_4(%arg0: i32, %arg1: i32) -> (i32, i32) {
    %c0_i32 = arith.constant 0 : i32
    return %arg1, %arg0 : i32, i32
  }
}

module attributes {stable_mosaic.version = 11 : i64} {
  func.func @vit_output_kernel(%arg0: i32, %arg1: i32, %arg2: memref<8x64xf32, #tpu.memory_space<vmem>>, %arg3: memref<64x32xf32, #tpu.memory_space<vmem>>, %arg4: memref<1x32xf32, #tpu.memory_space<vmem>>, %arg5: memref<8x32xf32, #tpu.memory_space<vmem>>, %arg6: memref<8x32xf32, #tpu.memory_space<vmem>>) attributes {dimension_semantics = [#tpu.dimension_semantics<parallel>, #tpu.dimension_semantics<parallel>], iteration_bounds = array<i64: 1, 2>, scalar_prefetch = 0 : i64, scratch_operands = 0 : i64, tpu.core_type = #tpu.core_type<tc>, window_params = [{transform_indices = @transform_0, window_bounds = array<i64: 8, 64>}, {transform_indices = @transform_1, window_bounds = array<i64: 64, 32>}, {transform_indices = @transform_2, window_bounds = array<i64: 1, 32>}, {transform_indices = @transform_3, window_bounds = array<i64: 8, 32>}, {transform_indices = @transform_4, window_bounds = array<i64: 8, 32>}]} {
    %c0 = arith.constant 0 : index
    %c0_0 = arith.constant 0 : index
    %0 = vector.load %arg2[%c0, %c0_0] : memref<8x64xf32, #tpu.memory_space<vmem>>, vector<8x64xf32>
    %c0_1 = arith.constant 0 : index
    %c0_2 = arith.constant 0 : index
    %1 = vector.load %arg3[%c0_1, %c0_2] : memref<64x32xf32, #tpu.memory_space<vmem>>, vector<64x32xf32>
    %cst = arith.constant dense<0.000000e+00> : vector<8x32xf32>
    %2 = tpu.matmul %0, %1, %cst {dimension_numbers = #tpu.dot_dimension_numbers<[1], [0], [0], [1], [0, 0, 1, 1], [], []>} : vector<8x64xf32>, vector<64x32xf32>, vector<8x32xf32> -> vector<8x32xf32>
    %c0_3 = arith.constant 0 : index
    %c0_4 = arith.constant 0 : index
    %3 = vector.load %arg4[%c0_3, %c0_4] : memref<1x32xf32, #tpu.memory_space<vmem>>, vector<1x32xf32>
    %4 = vector.broadcast %3 : vector<1x32xf32> to vector<8x32xf32>
    %5 = arith.addf %2, %4 : vector<8x32xf32>
    %c0_5 = arith.constant 0 : index
    %c0_6 = arith.constant 0 : index
    %6 = vector.load %arg5[%c0_5, %c0_6] : memref<8x32xf32, #tpu.memory_space<vmem>>, vector<8x32xf32>
    %7 = arith.addf %5, %6 : vector<8x32xf32>
    %c0_7 = arith.constant 0 : index
    %c0_8 = arith.constant 0 : index
    %8 = vector.load %arg6[%c0_7, %c0_8] : memref<8x32xf32, #tpu.memory_space<vmem>>, vector<8x32xf32>
    tpu.vector_store %arg6[%c0_7, %c0_8], %7 {strides = array<i32>} : memref<8x32xf32, #tpu.memory_space<vmem>>, vector<8x32xf32>,
    return
  }
  func.func @transform_0(%arg0: i32, %arg1: i32) -> (i32, i32) {
    %c0_i32 = arith.constant 0 : i32
    %c0_i32_0 = arith.constant 0 : i32
    return %arg1, %c0_i32 : i32, i32
  }
  func.func @transform_1(%arg0: i32, %arg1: i32) -> (i32, i32) {
    %c0_i32 = arith.constant 0 : i32
    %c0_i32_0 = arith.constant 0 : i32
    return %c0_i32, %arg0 : i32, i32
  }
  func.func @transform_2(%arg0: i32, %arg1: i32) -> (i32, i32) {
    %c0_i32 = arith.constant 0 : i32
    %c0_i32_0 = arith.constant 0 : i32
    return %c0_i32, %arg0 : i32, i32
  }
  func.func @transform_3(%arg0: i32, %arg1: i32) -> (i32, i32) {
    %c0_i32 = arith.constant 0 : i32
    return %arg1, %arg0 : i32, i32
  }
  func.func @transform_4(%arg0: i32, %arg1: i32) -> (i32, i32) {
    %c0_i32 = arith.constant 0 : i32
    return %arg1, %arg0 : i32, i32
  }
}

</mosaic_0001>

<bundles_post_ra>
// kernel: tpu_custom_call.1
= control target key start
LH: loop header
LB: loop body
LE: loop exit
PB: predicated region body
PF: predicated region fallthrough
CT: control target
= control target key end

     0   :  { %9 = vsyncpa [#allocation3], 0  ;;  %s821_s0 = inlined_call_operand.vmem [shape: f32[16,64], index: 0, kind: input, shape index: {}]   ;;  %s822_s1 = inlined_call_operand.vmem [shape: f32[64,32], index: 1, kind: input, shape index: {}]   ;;  %s823_s2 = inlined_call_operand.vmem [shape: f32[1,32], index: 2, kind: input, shape index: {}]   ;;  %s824_s3 = inlined_call_operand.vmem [shape: f32[16,32], index: 3, kind: input, shape index: {}]   ;;  %s825_s4 = inlined_call_operand.hbm [shape: f32[16,32], index: 4, kind: output, shape index: {}]  }
   0x1   :  { %11 = vsyncpa [#allocation3 + $0x1], 0  ;;  %s692_s15 = smov 0   ;;  %s694_s16 = smov 0  }
   0x2   :  { %s696_s17 = smov 0   ;;  %s698_s18 = smov 0  }
   0x3   :  { %s700_s19 = smov 0   ;;  %s702_s20 = smov 0  }
   0x4 LB: > { %s485_s21 = sadd.s32 4294967295, %s662_s20   ;;  %s486_s22 = sadd.s32 4294967294, %s662_s20   ;;  %s662_s20 = sphi %s702_s20, %s17_s20   ;;  %s658_s19 = sphi %s700_s19, %s832_s19   ;;  %s654_s18 = sphi %s698_s18, %s831_s18   ;;  %s650_s17 = sphi %s696_s17, %s830_s17   ;;  %s646_s16 = sphi %s694_s16, %s829_s16   ;;  %s642_s15 = sphi %s692_s15, %s828_s15  }
   0x5   : > { %s26_s23 = sadd.s32 1, %s658_s19  ;;  %s144_s24 = sadd.s32 1, %s650_s17 }
   0x6   : > { %p27_p0 = scmp.ge.s32.totalorder %s26_s23, 2  ;;  %p154_p1 = scmp.ne.s32.totalorder %s650_s17, %s646_s16 }
   0x7   : > { %p155_p2 = scmp.eq.s32.totalorder %s485_s21, 1  ;;  %p160_p3 = scmp.ne.s32.totalorder %s646_s16, %s642_s15 }
   0x8   : > { %s834_s23 = smov (%p27_p0, %s26_s23), 0  ;;  %p161_p5 = scmp.eq.s32.totalorder %s486_s22, 1 }
   0x9   : > { %p732_p4 = por %p155_p2, %p154_p1  ;;  %s139_s26 = ssub.s32 %s658_s19, %s834_s23 }
   0xa   : > { %p491_p6 = scmp.ge.s32.totalorder %s662_s20, 1  ;;  %p142_p7 = scmp.eq.s32.totalorder %s139_s26, 0 }
   0xb   : > { %p739_p8 = por %p161_p5, %p160_p3  ;;  %p209_p9 = scmp.lt.s32.totalorder %s662_s20, 3 }
   0xc   : > { %s745_s28 = scalar_select %p142_p7, %s650_s17, %s144_s24  }
   0xd   : > { %p210_p10 = pnand %p491_p6, %p209_p9 }
   0xe   : > { %p248_p11 = scmp.lt.s32.totalorder (!%p210_p10), %s654_s18, 1  ;;  %s245_s8 = sand.u32 (!%p210_p10), 1, %s646_s16  }
   0xf   : > { %213 = sbr.rel (%p210_p10) target bundleno = 247 (0xf7), region = 36  ;;  %s498_s22 = sshll.u32 (!%p210_p10), %s654_s18, 7 }
  0x10   : > { %s666_s7 = smov (!%p210_p10), [#allocation2]  }
  0x14   : > { %v274_v0 = vld [vmem:[%s822_s1 + $0x38] sm:$0xff]  ;;  %v664_v1 = vmov 0.0   ;;  %v273_v2 = vld [vmem:[%s822_s1 + $0x30] sm:$0xff]  ;;  %vm665_vm0 = vmmov 0   ;;  %v272_v3 = vld [vmem:[%s822_s1 + $0x28] sm:$0xff]  ;;  %s249_s9 = scalar_select %p248_p11, %s654_s18, 1 }
  0x15   : > { %510 = vmatprep.subr.mxu0 %v664_v1  ;;  %526 = vmatprep.mubr.msk.f32.mxu0 %vm665_vm0, %v664_v1  ;;  %v271_v4 = vld [vmem:[%s822_s1 + $0x20] sm:$0xff]  ;;  %v270_v5 = vld [vmem:[%s822_s1 + $0x18] sm:$0xff]  ;;  %v269_v6 = vld [vmem:[%s822_s1 + $0x10] sm:$0xff]  ;;  %vm282_vm1 = vcmask 523264   ;;  %vm358_vm2 = vcmask 261120   ;;  %s590_s18 = sshll.u32 %s666_s7, 4  ;;  %s591_s18 = int_to_ptr.vmem [resolvable:$false] %s590_s18 }
  0x16   : > { %511 = vmatpush3.msra.mxu0 %v274_v0  ;;  %s493_s14 = sshll.u32 %s249_s9, 3  ;;  %v268_v7 = vld [vmem:[%s822_s1 + $0x8] sm:$0xff]  ;;  %v267_v8 = vld [vmem:[%s822_s1] sm:$0xff]  ;;  %s492_s9 = sshll.u32 %s245_s8, 3 }
  0x17   : > { %512 = vmatprep.subr.mxu0 %v664_v1  ;;  %s251_s5 = scalar_lea.vmem %s821_s0, %s493_s14  ;;  %s265_s12 = scalar_lea.vmem %s824_s3, %s493_s14  ;;  %v495_v10 = vld [vmem:[%s823_s2] ss:$0 sm:$0xff] }
  0x18   : > { %513 = vmatpush3.msra.mxu0 %v273_v2  ;;  %v266_v9 = vld [vmem:[%s251_s5] sm:$0xff]  ;;  %s247_s24 = scalar_lea.vmem [#allocation2], %s492_s9  ;;  %s373_s5 = scalar_lea.hbm %s825_s4, %s498_s22 }
  0x19   : > { %514 = vmatprep.subr.mxu0 %v664_v1  ;;  %v356_v12 = vld [vmem:[%s265_s12] sm:$0xff]  ;;  %s375_s26 = sshll.u32 %s247_s24, 4  ;;  %s361_s14 = scalar_lea.sflag [#allocation3], %s245_s8  ;;  %s376_s26 = int_to_ptr.vmem [resolvable:$true] %s375_s26 }
  0x1a   : > { %515 = vmatpush3.msra.mxu0 %v272_v3  ;;  %s586_s6 = scalar_lea.vmem %s376_s26, 128  ;;  %s592_s9 = scalar_lea.vmem %s591_s18, 256 }
  0x1b   : > { %516 = vmatprep.subr.mxu0 %v664_v1  ;;  %p587_p12 = scmp.ne.s32.totalorder %s376_s26, %s586_s6  ;;  %p593_p1 = scmp.lt.s32.totalorder %s376_s26, %s591_s18 }
  0x1c   : > { %517 = vmatpush3.msra.mxu0 %v271_v4  ;;  %p594_p2 = scmp.lt.s32.totalorder %s592_s9, %s586_s6 }
  0x1d   : > { %518 = vmatprep.subr.mxu0 %v664_v1  ;;  %p588_p13 = pnand %p587_p12, %p732_p4 }
  0x1e   : > { %519 = vmatpush3.msra.mxu0 %v270_v5  ;;  %p595_p3 = por %p594_p2, %p593_p1 }
  0x1f   : > { %520 = vmatprep.subr.mxu0 %v664_v1  ;;  %p589_p0 = pneg %p588_p13 }
  0x20   : > { %521 = vmatpush3.msra.mxu0 %v269_v6 }
  0x21   : > { %522 = vmatprep.subr.mxu0 %v664_v1  ;;  %p596_p5 = pnand %p595_p3, %p589_p0 }
  0x22   : > { %523 = vmatpush3.msra.mxu0 %v268_v7 }
  0x23   : > { %524 = vmatprep.subr.mxu0 %v664_v1 }
  0x24   : > { %525 = vmatpush3.msra.mxu0 %v267_v8 }
  0x25   : > { %527 = vmatmul.mubr.msk.f32.vlgmr.msra.gmra.mxu0 %vm282_vm1, %v266_v9 }
  0xe5   : > { %v352_v11 = vpop.f32.mrf.mxu0 }
  0xe6   : > { %v353_v13 = vadd.f32 %v495_v10, %v352_v11 }
  0xe7   : > { %v528_v14 = vpop.f32.mrf.mxu0 }
  0xe8   : > { %v357_v15 = vadd.f32 %v356_v12, %v353_v13 }
  0xea   : > { %359 = vst.msk [vmem:[%s247_s24] sm:$0xff] %vm358_vm2, %v357_v15 }
  0xeb   : > { %599 = shalt.err (!%p596_p5)
}
  0xec   : > { %s600_s10 = scalar_lea.hbm %s373_s5, 128  ;;  %s604_s12 = scalar_lea.hbm %s825_s4, 256 }
  0xed   : > { %p601_p6 = scmp.ne.s32.totalorder %s373_s5, %s600_s10  ;;  %p605_p10 = scmp.lt.s32.totalorder %s373_s5, %s825_s4 }
  0xee   : > { %p606_p11 = scmp.lt.s32.totalorder %s604_s12, %s600_s10 }
  0xef   : > { %p602_p7 = pnand %p601_p6, %p732_p4 }
  0xf0   : > { %p607_p12 = por %p606_p11, %p605_p10 }
  0xf1   : > { %p603_p9 = pneg %p602_p7 }
  0xf3   : > { %p608_p13 = pnand %p607_p12, %p603_p9 }
  0xf5   : > { %611 = shalt.err (!%p608_p13)
}
  0xf6   : > { %529 = dma.vmem_to_hbm [thread:$0]  (%p732_p4), %s376_s26, 128, %s373_s5, %s361_s14  }
  0xf7 PF: > { %p535_p0 = scmp.ge.s32.totalorder %s662_s20, 2  ;;  %s387_s22 = sand.u32 1, %s642_s15  }
  0xf8   : > { %s388_s24 = scalar_lea.sflag [#allocation3], %s387_s22 }
  0xf9   : > { %p532_p1 = pnand %p535_p0, %p739_p8 }
  0xfb   : > { %p533_p2 = pneg %p532_p1 }
  0xfd   : > { %637 = dma.done.wait (%p533_p2), %s388_s24, 128  }
  0xfe   : > { %639 = vsyncadd (%p533_p2), %s388_s24, 4294967168  ;;  %s17_s20 = sadd.s32 1, %s662_s20   ;;  %s828_s15 = smov %s646_s16 }
  0xff   : > { %p14_p3 = scmp.ge.s32.totalorder %s17_s20, 4   ;;  %s829_s16 = smov %s650_s17 }
 0x100   : > { %s830_s17 = smov %s745_s28  ;;  %s831_s18 = smov %s658_s19 }
 0x101   : > { %s832_s19 = smov %s834_s23  ;;  %16 = sbr.rel (!%p14_p3) target bundleno = 4 (0x4), region = 80 }
 0x106   :  { %393 = vsyncpa [#allocation3], 1 }
 0x107   :  { %395 = vsyncpa [#allocation3 + $0x1], 1 }

// kernel: tpu_custom_call.1
= control target key start
LH: loop header
LB: loop body
LE: loop exit
PB: predicated region body
PF: predicated region fallthrough
CT: control target
= control target key end

     0   :  { %9 = vsyncpa [#allocation3], 0  ;;  %s821_s0 = inlined_call_operand.vmem [shape: f32[16,64], index: 0, kind: input, shape index: {}]   ;;  %s822_s1 = inlined_call_operand.vmem [shape: f32[64,32], index: 1, kind: input, shape index: {}]   ;;  %s823_s2 = inlined_call_operand.vmem [shape: f32[1,32], index: 2, kind: input, shape index: {}]   ;;  %s824_s3 = inlined_call_operand.vmem [shape: f32[16,32], index: 3, kind: input, shape index: {}]   ;;  %s825_s4 = inlined_call_operand.hbm [shape: f32[16,32], index: 4, kind: output, shape index: {}]  }
   0x1   :  { %11 = vsyncpa [#allocation3 + $0x1], 0  ;;  %s692_s15 = smov 0   ;;  %s694_s16 = smov 0  }
   0x2   :  { %s696_s17 = smov 0   ;;  %s698_s18 = smov 0  }
   0x3   :  { %s700_s19 = smov 0   ;;  %s702_s20 = smov 0  }
   0x4 LB: > { %s485_s21 = sadd.s32 4294967295, %s662_s20   ;;  %s486_s22 = sadd.s32 4294967294, %s662_s20   ;;  %s662_s20 = sphi %s702_s20, %s17_s20   ;;  %s658_s19 = sphi %s700_s19, %s832_s19   ;;  %s654_s18 = sphi %s698_s18, %s831_s18   ;;  %s650_s17 = sphi %s696_s17, %s830_s17   ;;  %s646_s16 = sphi %s694_s16, %s829_s16   ;;  %s642_s15 = sphi %s692_s15, %s828_s15  }
   0x5   : > { %s26_s23 = sadd.s32 1, %s658_s19  ;;  %s144_s24 = sadd.s32 1, %s650_s17 }
   0x6   : > { %p27_p0 = scmp.ge.s32.totalorder %s26_s23, 2  ;;  %p154_p1 = scmp.ne.s32.totalorder %s650_s17, %s646_s16 }
   0x7   : > { %p155_p2 = scmp.eq.s32.totalorder %s485_s21, 1  ;;  %p160_p3 = scmp.ne.s32.totalorder %s646_s16, %s642_s15 }
   0x8   : > { %s834_s23 = smov (%p27_p0, %s26_s23), 0  ;;  %p161_p5 = scmp.eq.s32.totalorder %s486_s22, 1 }
   0x9   : > { %p732_p4 = por %p155_p2, %p154_p1  ;;  %s139_s26 = ssub.s32 %s658_s19, %s834_s23 }
   0xa   : > { %p491_p6 = scmp.ge.s32.totalorder %s662_s20, 1  ;;  %p142_p7 = scmp.eq.s32.totalorder %s139_s26, 0 }
   0xb   : > { %p739_p8 = por %p161_p5, %p160_p3  ;;  %p209_p9 = scmp.lt.s32.totalorder %s662_s20, 3 }
   0xc   : > { %s745_s28 = scalar_select %p142_p7, %s650_s17, %s144_s24  }
   0xd   : > { %p210_p10 = pnand %p491_p6, %p209_p9 }
   0xe   : > { %p248_p11 = scmp.lt.s32.totalorder (!%p210_p10), %s654_s18, 1  ;;  %s245_s8 = sand.u32 (!%p210_p10), 1, %s646_s16  }
   0xf   : > { %213 = sbr.rel (%p210_p10) target bundleno = 247 (0xf7), region = 36  ;;  %s498_s22 = sshll.u32 (!%p210_p10), %s654_s18, 7 }
  0x10   : > { %s666_s7 = smov (!%p210_p10), [#allocation2]  }
  0x14   : > { %v274_v0 = vld [vmem:[%s822_s1 + $0x38] sm:$0xff]  ;;  %v664_v1 = vmov 0.0   ;;  %v273_v2 = vld [vmem:[%s822_s1 + $0x30] sm:$0xff]  ;;  %vm665_vm0 = vmmov 0   ;;  %v272_v3 = vld [vmem:[%s822_s1 + $0x28] sm:$0xff]  ;;  %s249_s9 = scalar_select %p248_p11, %s654_s18, 1 }
  0x15   : > { %510 = vmatprep.subr.mxu0 %v664_v1  ;;  %526 = vmatprep.mubr.msk.f32.mxu0 %vm665_vm0, %v664_v1  ;;  %v271_v4 = vld [vmem:[%s822_s1 + $0x20] sm:$0xff]  ;;  %v270_v5 = vld [vmem:[%s822_s1 + $0x18] sm:$0xff]  ;;  %v269_v6 = vld [vmem:[%s822_s1 + $0x10] sm:$0xff]  ;;  %vm282_vm1 = vcmask 523264   ;;  %vm358_vm2 = vcmask 261120   ;;  %s590_s18 = sshll.u32 %s666_s7, 4  ;;  %s591_s18 = int_to_ptr.vmem [resolvable:$false] %s590_s18 }
  0x16   : > { %511 = vmatpush3.msra.mxu0 %v274_v0  ;;  %s493_s14 = sshll.u32 %s249_s9, 3  ;;  %v268_v7 = vld [vmem:[%s822_s1 + $0x8] sm:$0xff]  ;;  %v267_v8 = vld [vmem:[%s822_s1] sm:$0xff]  ;;  %s492_s9 = sshll.u32 %s245_s8, 3 }
  0x17   : > { %512 = vmatprep.subr.mxu0 %v664_v1  ;;  %s251_s5 = scalar_lea.vmem %s821_s0, %s493_s14  ;;  %s265_s12 = scalar_lea.vmem %s824_s3, %s493_s14  ;;  %v495_v10 = vld [vmem:[%s823_s2] ss:$0 sm:$0xff] }
  0x18   : > { %513 = vmatpush3.msra.mxu0 %v273_v2  ;;  %v266_v9 = vld [vmem:[%s251_s5] sm:$0xff]  ;;  %s247_s24 = scalar_lea.vmem [#allocation2], %s492_s9  ;;  %s373_s5 = scalar_lea.hbm %s825_s4, %s498_s22 }
  0x19   : > { %514 = vmatprep.subr.mxu0 %v664_v1  ;;  %v356_v12 = vld [vmem:[%s265_s12] sm:$0xff]  ;;  %s375_s26 = sshll.u32 %s247_s24, 4  ;;  %s361_s14 = scalar_lea.sflag [#allocation3], %s245_s8  ;;  %s376_s26 = int_to_ptr.vmem [resolvable:$true] %s375_s26 }
  0x1a   : > { %515 = vmatpush3.msra.mxu0 %v272_v3  ;;  %s586_s6 = scalar_lea.vmem %s376_s26, 128  ;;  %s592_s9 = scalar_lea.vmem %s591_s18, 256 }
  0x1b   : > { %516 = vmatprep.subr.mxu0 %v664_v1  ;;  %p587_p12 = scmp.ne.s32.totalorder %s376_s26, %s586_s6  ;;  %p593_p1 = scmp.lt.s32.totalorder %s376_s26, %s591_s18 }
  0x1c   : > { %517 = vmatpush3.msra.mxu0 %v271_v4  ;;  %p594_p2 = scmp.lt.s32.totalorder %s592_s9, %s586_s6 }
  0x1d   : > { %518 = vmatprep.subr.mxu0 %v664_v1  ;;  %p588_p13 = pnand %p587_p12, %p732_p4 }
  0x1e   : > { %519 = vmatpush3.msra.mxu0 %v270_v5  ;;  %p595_p3 = por %p594_p2, %p593_p1 }
  0x1f   : > { %520 = vmatprep.subr.mxu0 %v664_v1  ;;  %p589_p0 = pneg %p588_p13 }
  0x20   : > { %521 = vmatpush3.msra.mxu0 %v269_v6 }
  0x21   : > { %522 = vmatprep.subr.mxu0 %v664_v1  ;;  %p596_p5 = pnand %p595_p3, %p589_p0 }
  0x22   : > { %523 = vmatpush3.msra.mxu0 %v268_v7 }
  0x23   : > { %524 = vmatprep.subr.mxu0 %v664_v1 }
  0x24   : > { %525 = vmatpush3.msra.mxu0 %v267_v8 }
  0x25   : > { %527 = vmatmul.mubr.msk.f32.vlgmr.msra.gmra.mxu0 %vm282_vm1, %v266_v9 }
  0xe5   : > { %v352_v11 = vpop.f32.mrf.mxu0 }
  0xe6   : > { %v353_v13 = vadd.f32 %v495_v10, %v352_v11 }
  0xe7   : > { %v528_v14 = vpop.f32.mrf.mxu0 }
  0xe8   : > { %v357_v15 = vadd.f32 %v356_v12, %v353_v13 }
  0xea   : > { %359 = vst.msk [vmem:[%s247_s24] sm:$0xff] %vm358_vm2, %v357_v15 }
  0xeb   : > { %599 = shalt.err (!%p596_p5)
}
  0xec   : > { %s600_s10 = scalar_lea.hbm %s373_s5, 128  ;;  %s604_s12 = scalar_lea.hbm %s825_s4, 256 }
  0xed   : > { %p601_p6 = scmp.ne.s32.totalorder %s373_s5, %s600_s10  ;;  %p605_p10 = scmp.lt.s32.totalorder %s373_s5, %s825_s4 }
  0xee   : > { %p606_p11 = scmp.lt.s32.totalorder %s604_s12, %s600_s10 }
  0xef   : > { %p602_p7 = pnand %p601_p6, %p732_p4 }
  0xf0   : > { %p607_p12 = por %p606_p11, %p605_p10 }
  0xf1   : > { %p603_p9 = pneg %p602_p7 }
  0xf3   : > { %p608_p13 = pnand %p607_p12, %p603_p9 }
  0xf5   : > { %611 = shalt.err (!%p608_p13)
}
  0xf6   : > { %529 = dma.vmem_to_hbm [thread:$0]  (%p732_p4), %s376_s26, 128, %s373_s5, %s361_s14  }
  0xf7 PF: > { %p535_p0 = scmp.ge.s32.totalorder %s662_s20, 2  ;;  %s387_s22 = sand.u32 1, %s642_s15  }
  0xf8   : > { %s388_s24 = scalar_lea.sflag [#allocation3], %s387_s22 }
  0xf9   : > { %p532_p1 = pnand %p535_p0, %p739_p8 }
  0xfb   : > { %p533_p2 = pneg %p532_p1 }
  0xfd   : > { %637 = dma.done.wait (%p533_p2), %s388_s24, 128  }
  0xfe   : > { %639 = vsyncadd (%p533_p2), %s388_s24, 4294967168  ;;  %s17_s20 = sadd.s32 1, %s662_s20   ;;  %s828_s15 = smov %s646_s16 }
  0xff   : > { %p14_p3 = scmp.ge.s32.totalorder %s17_s20, 4   ;;  %s829_s16 = smov %s650_s17 }
 0x100   : > { %s830_s17 = smov %s745_s28  ;;  %s831_s18 = smov %s658_s19 }
 0x101   : > { %s832_s19 = smov %s834_s23  ;;  %16 = sbr.rel (!%p14_p3) target bundleno = 4 (0x4), region = 80 }
 0x106   :  { %393 = vsyncpa [#allocation3], 1 }
 0x107   :  { %395 = vsyncpa [#allocation3 + $0x1], 1 }

</bundles_post_ra>
